<compile_context>
chip_gen: v5e
topology: v5e:2x2
jax: 0.10.0
libtpu: 0.0.40
codegen_flags: <defaults>
</compile_context>

<pallas_src>
import functools

import jax
import jax.numpy as jnp
from jax.experimental import pallas as pl
from jax.experimental.pallas import tpu as pltpu

INPUT_SIZE = 28 * 28   # 784 (K; intentionally left unpadded on the streamed input)
HIDDEN_SIZE = 100
OUTPUT_SIZE = 10

H_PAD = 128            # hidden 100 -> 128 : dense vregs / MXU N tile (weights only)
O_PAD = 128            # output 10  -> 128 : unmasked lane-dense output stores


def _sigmoid_approx(x):
    # exp -> EUP; approximate reciprocal -> EUP vrcp slot (keeps VALU free).
    return pl.reciprocal(1.0 + jnp.exp(-x), approx=True)


def _sigmoid_exact(x):
    # Exact divide for the output layer (tiny tile, off the binding slot).
    return 1.0 / (1.0 + jnp.exp(-x))


def mlp_kernel(x_ref, w1_ref, b1_ref, w2_ref, b2_ref, o_ref):
    # Cast the streamed activation to bf16 on the VPU (no wrapper staging pass).
    x = x_ref[...].astype(jnp.bfloat16)
    # (tb, 784)bf16 @ (784, 128)bf16 -> f32 accumulation on the MXU.
    h = jnp.dot(x, w1_ref[...], preferred_element_type=jnp.float32)
    h = _sigmoid_approx(h + b1_ref[...])               # bias add + sigmoid in f32
    # (tb, 128)bf16 @ (128, 128)bf16 -> f32 accumulation.
    y = jnp.dot(h.astype(jnp.bfloat16), w2_ref[...],
                preferred_element_type=jnp.float32)
    o_ref[...] = _sigmoid_exact(y + b2_ref[...]).astype(o_ref.dtype)  # bf16 store


def _round_up(n, m):
    return ((n + m - 1) // m) * m


def _pad_to(a, shape):
    pads = [(0, t - s) for s, t in zip(a.shape, shape)]
    return jnp.pad(a, pads)


@functools.partial(jax.jit, static_argnames=("tb",))
def net_forward(x, w1, b1, w2, b2, *, tb=512):
    """x: any shape reshapable to (B, 784). Returns (B, 10) float32.

    Equivalent to: sigmoid(sigmoid(x.reshape(-1, 784) @ w1 + b1) @ w2 + b2)
    (weights stored transposed vs. torch.nn.Linear).
    """
    x = x.reshape(-1, INPUT_SIZE)
    B = x.shape[0]
    tb_eff = min(tb, _round_up(B, 8))     # don't over-allocate tiles for small B
    grid = (pl.cdiv(B, tb_eff),)          # no batch padding; edge block is partial

    # Only the tiny, VMEM-resident weights/biases get padded + cast. Zero pad
    # columns of w1 / rows+columns of w2 keep the valid outputs exact; padded
    # output lanes end up as sigmoid(0)=0.5 and are sliced away below.
    w1p = _pad_to(w1, (INPUT_SIZE, H_PAD)).astype(jnp.bfloat16)
    b1p = _pad_to(b1.reshape(1, -1), (1, H_PAD)).astype(jnp.float32)
    w2p = _pad_to(w2, (H_PAD, O_PAD)).astype(jnp.bfloat16)
    b2p = _pad_to(b2.reshape(1, -1), (1, O_PAD)).astype(jnp.float32)

    x_bytes = jnp.dtype(x.dtype).itemsize
    cost = pl.CostEstimate(
        flops=2 * B * (INPUT_SIZE * H_PAD + H_PAD * O_PAD),
        transcendentals=B * (H_PAD + O_PAD),
        bytes_accessed=(B * INPUT_SIZE * x_bytes        # x read (dominant stream)
                        + B * O_PAD * 2                 # bf16 output writeback
                        + w1p.size * 2 + w2p.size * 2   # bf16 weights
                        + (H_PAD + O_PAD) * 4),         # f32 biases
    )

    out = pl.pallas_call(
        mlp_kernel,
        out_shape=jax.ShapeDtypeStruct((B, O_PAD), jnp.bfloat16),
        grid_spec=pltpu.PrefetchScalarGridSpec(
            num_scalar_prefetch=0,
            grid=grid,
            in_specs=[
                # batch tile of the raw input; last dim equals the full array dim
                pl.BlockSpec((tb_eff, INPUT_SIZE), lambda i: (i, 0)),
                # constant index_maps -> weights/biases stay VMEM-resident
                pl.BlockSpec((INPUT_SIZE, H_PAD), lambda i: (0, 0)),
                pl.BlockSpec((1, H_PAD), lambda i: (0, 0)),
                pl.BlockSpec((H_PAD, O_PAD), lambda i: (0, 0)),
                pl.BlockSpec((1, O_PAD), lambda i: (0, 0)),
            ],
            out_specs=pl.BlockSpec((tb_eff, O_PAD), lambda i: (i, 0)),
        ),
        compiler_params=pltpu.CompilerParams(
            # batch axis is independent -> shard across TensorCores where possible
            dimension_semantics=("parallel",),
            # headroom for larger tb sweeps (v5e default scoped VMEM is 16 MiB)
            vmem_limit_bytes=32 * 1024 * 1024,
        ),
        cost_estimate=cost,
    )(x, w1p, b1p, w2p, b2p)

    # Drop padded output lanes and return f32 (PyTorch semantics).
    return out[:, :OUTPUT_SIZE].astype(jnp.float32)


def init_params(key):
    """Deterministic init mimicking torch.nn.Linear (uniform(-1/sqrt(fan_in), +))."""
    k1, k2, k3, k4 = jax.random.split(key, 4)
    bound1 = 1.0 / jnp.sqrt(jnp.float32(INPUT_SIZE))
    bound2 = 1.0 / jnp.sqrt(jnp.float32(HIDDEN_SIZE))
    w1 = jax.random.uniform(k1, (INPUT_SIZE, HIDDEN_SIZE), jnp.float32, -bound1, bound1)
    b1 = jax.random.uniform(k2, (1, HIDDEN_SIZE), jnp.float32, -bound1, bound1)
    w2 = jax.random.uniform(k3, (HIDDEN_SIZE, OUTPUT_SIZE), jnp.float32, -bound2, bound2)
    b2 = jax.random.uniform(k4, (1, OUTPUT_SIZE), jnp.float32, -bound2, bound2)
    return w1, b1, w2, b2


if __name__ == "__main__":
    key = jax.random.PRNGKey(0)
    k_x, k_p = jax.random.split(key)

    # Small batch of "images"; any leading shape works, forward flattens to (B, 784),
    # exactly like x.reshape(-1, INPUT_SIZE) in the PyTorch module.
    B = 8
    imgs = jax.random.normal(k_x, (B, 1, 28, 28), jnp.float32)

    w1, b1, w2, b2 = init_params(k_p)

    out = net_forward(imgs, w1, b1, w2, b2)
    out = jax.block_until_ready(out)
    assert out.shape == (B, OUTPUT_SIZE)

    # References.
    x = imgs.reshape(-1, INPUT_SIZE)
    # Exact f32 reference (PyTorch semantics).
    ref_f32 = jax.nn.sigmoid(jax.nn.sigmoid(x @ w1 + b1) @ w2 + b2)
    # bf16-matmul-matched reference (same matmul precision as the kernel).
    h_bf = jax.nn.sigmoid(
        jnp.dot(x.astype(jnp.bfloat16), w1.astype(jnp.bfloat16),
                preferred_element_type=jnp.float32) + b1)
    ref_bf = jax.nn.sigmoid(
        jnp.dot(h_bf.astype(jnp.bfloat16), w2.astype(jnp.bfloat16),
                preferred_element_type=jnp.float32) + b2)

    assert jnp.allclose(out, ref_bf, atol=2e-2, rtol=2e-2)   # vs matched-precision ref
    assert jnp.allclose(out, ref_f32, atol=5e-2, rtol=5e-2)  # sanity vs exact f32 ref

    print("KERNEL_OK")
</pallas_src>

<mosaic_0001>
module attributes {stable_mosaic.version = 11 : i64} {
  func.func @mlp_kernel(%arg0: i32, %arg1: memref<8x784xf32, #tpu.memory_space<vmem>>, %arg2: memref<784x128xbf16, #tpu.memory_space<vmem>>, %arg3: memref<1x128xf32, #tpu.memory_space<vmem>>, %arg4: memref<128x128xbf16, #tpu.memory_space<vmem>>, %arg5: memref<1x128xf32, #tpu.memory_space<vmem>>, %arg6: memref<8x128xbf16, #tpu.memory_space<vmem>>) attributes {dimension_semantics = [#tpu.dimension_semantics<parallel>], iteration_bounds = array<i64: 1>, scalar_prefetch = 0 : i64, scratch_operands = 0 : i64, tpu.core_type = #tpu.core_type<tc>, window_params = [{transform_indices = @transform_0, window_bounds = array<i64: 8, 784>}, {pipeline_mode = #tpu.pipeline_mode<synchronous>, transform_indices = @transform_1, window_bounds = array<i64: 784, 128>}, {pipeline_mode = #tpu.pipeline_mode<synchronous>, transform_indices = @transform_2, window_bounds = array<i64: 1, 128>}, {pipeline_mode = #tpu.pipeline_mode<synchronous>, transform_indices = @transform_3, window_bounds = array<i64: 128, 128>}, {pipeline_mode = #tpu.pipeline_mode<synchronous>, transform_indices = @transform_4, window_bounds = array<i64: 1, 128>}, {transform_indices = @transform_5, window_bounds = array<i64: 8, 128>}]} {
    %c0 = arith.constant 0 : index
    %c0_0 = arith.constant 0 : index
    %0 = vector.load %arg1[%c0, %c0_0] : memref<8x784xf32, #tpu.memory_space<vmem>>, vector<8x784xf32>
    %1 = arith.truncf %0 : vector<8x784xf32> to vector<8x784xbf16>
    %c0_1 = arith.constant 0 : index
    %c0_2 = arith.constant 0 : index
    %2 = vector.load %arg2[%c0_1, %c0_2] : memref<784x128xbf16, #tpu.memory_space<vmem>>, vector<784x128xbf16>
    %cst = arith.constant dense<0.000000e+00> : vector<8x128xf32>
    %3 = tpu.matmul %1, %2, %cst {dimension_numbers = #tpu.dot_dimension_numbers<[1], [0], [0], [1], [0, 0, 1, 1], [], []>} : vector<8x784xbf16>, vector<784x128xbf16>, vector<8x128xf32> -> vector<8x128xf32>
    %c0_3 = arith.constant 0 : index
    %c0_4 = arith.constant 0 : index
    %4 = vector.load %arg3[%c0_3, %c0_4] : memref<1x128xf32, #tpu.memory_space<vmem>>, vector<1x128xf32>
    %5 = vector.broadcast %4 : vector<1x128xf32> to vector<8x128xf32>
    %6 = arith.addf %3, %5 : vector<8x128xf32>
    %cst_5 = arith.constant 0.000000e+00 : f32
    %7 = vector.broadcast %cst_5 : f32 to vector<8x128xf32>
    %8 = arith.subf %7, %6 : vector<8x128xf32>
    %9 = math.exp %8 : vector<8x128xf32>
    %cst_6 = arith.constant 1.000000e+00 : f32
    %10 = vector.broadcast %cst_6 : f32 to vector<8x128xf32>
    %11 = arith.addf %10, %9 : vector<8x128xf32>
    %12 = tpu.reciprocal %11 {approx = true} : vector<8x128xf32> -> vector<8x128xf32>
    %13 = arith.truncf %12 : vector<8x128xf32> to vector<8x128xbf16>
    %c0_7 = arith.constant 0 : index
    %c0_8 = arith.constant 0 : index
    %14 = vector.load %arg4[%c0_7, %c0_8] : memref<128x128xbf16, #tpu.memory_space<vmem>>, vector<128x128xbf16>
    %cst_9 = arith.constant dense<0.000000e+00> : vector<8x128xf32>
    %15 = tpu.matmul %13, %14, %cst_9 {dimension_numbers = #tpu.dot_dimension_numbers<[1], [0], [0], [1], [0, 0, 1, 1], [], []>} : vector<8x128xbf16>, vector<128x128xbf16>, vector<8x128xf32> -> vector<8x128xf32>
    %c0_10 = arith.constant 0 : index
    %c0_11 = arith.constant 0 : index
    %16 = vector.load %arg5[%c0_10, %c0_11] : memref<1x128xf32, #tpu.memory_space<vmem>>, vector<1x128xf32>
    %17 = vector.broadcast %16 : vector<1x128xf32> to vector<8x128xf32>
    %18 = arith.addf %15, %17 : vector<8x128xf32>
    %cst_12 = arith.constant 0.000000e+00 : f32
    %19 = vector.broadcast %cst_12 : f32 to vector<8x128xf32>
    %20 = arith.subf %19, %18 : vector<8x128xf32>
    %21 = math.exp %20 : vector<8x128xf32>
    %cst_13 = arith.constant 1.000000e+00 : f32
    %22 = vector.broadcast %cst_13 : f32 to vector<8x128xf32>
    %23 = arith.addf %22, %21 : vector<8x128xf32>
    %cst_14 = arith.constant 1.000000e+00 : f32
    %24 = vector.broadcast %cst_14 : f32 to vector<8x128xf32>
    %25 = arith.divf %24, %23 : vector<8x128xf32>
    %26 = arith.truncf %25 : vector<8x128xf32> to vector<8x128xbf16>
    %c0_15 = arith.constant 0 : index
    %c0_16 = arith.constant 0 : index
    %27 = vector.load %arg6[%c0_15, %c0_16] : memref<8x128xbf16, #tpu.memory_space<vmem>>, vector<8x128xbf16>
    tpu.vector_store %arg6[%c0_15, %c0_16], %26 {strides = array<i32>} : memref<8x128xbf16, #tpu.memory_space<vmem>>, vector<8x128xbf16>,
    return
  }
  func.func @transform_0(%arg0: i32) -> (i32, i32) {
    %c0_i32 = arith.constant 0 : i32
    %c0_i32_0 = arith.constant 0 : i32
    return %arg0, %c0_i32 : i32, i32
  }
  func.func @transform_1(%arg0: i32) -> (i32, i32) {
    %c0_i32 = arith.constant 0 : i32
    %c0_i32_0 = arith.constant 0 : i32
    %c0_i32_1 = arith.constant 0 : i32
    return %c0_i32, %c0_i32_0 : i32, i32
  }
  func.func @transform_2(%arg0: i32) -> (i32, i32) {
    %c0_i32 = arith.constant 0 : i32
    %c0_i32_0 = arith.constant 0 : i32
    %c0_i32_1 = arith.constant 0 : i32
    return %c0_i32, %c0_i32_0 : i32, i32
  }
  func.func @transform_3(%arg0: i32) -> (i32, i32) {
    %c0_i32 = arith.constant 0 : i32
    %c0_i32_0 = arith.constant 0 : i32
    %c0_i32_1 = arith.constant 0 : i32
    return %c0_i32, %c0_i32_0 : i32, i32
  }
  func.func @transform_4(%arg0: i32) -> (i32, i32) {
    %c0_i32 = arith.constant 0 : i32
    %c0_i32_0 = arith.constant 0 : i32
    %c0_i32_1 = arith.constant 0 : i32
    return %c0_i32, %c0_i32_0 : i32, i32
  }
  func.func @transform_5(%arg0: i32) -> (i32, i32) {
    %c0_i32 = arith.constant 0 : i32
    %c0_i32_0 = arith.constant 0 : i32
    return %arg0, %c0_i32 : i32, i32
  }
}

</mosaic_0001>

<bundles_post_ra>
// kernel: net_forward.1
= control target key start
LH: loop header
LB: loop body
LE: loop exit
PB: predicated region body
PF: predicated region fallthrough
CT: control target
= control target key end

     0   :  { %vm431_vm0 = vcmask 130048   ;;  %s1165_s1 = inlined_call_operand.vmem [shape: bf16[784,128], index: 1, kind: input, shape index: {}]   ;;  %s1166_s2 = inlined_call_operand.vmem [shape: f32[1,128], index: 2, kind: input, shape index: {}]   ;;  %s1167_s0 = inlined_call_operand.vmem [shape: f32[8,784], index: 0, kind: input, shape index: {}]   ;;  %s1168_s4 = inlined_call_operand.vmem [shape: f32[1,128], index: 4, kind: input, shape index: {}]   ;;  %s1169_s3 = inlined_call_operand.vmem [shape: bf16[128,128], index: 3, kind: input, shape index: {}]   ;;  %s1170_s5 = inlined_call_operand.vmem [shape: bf16[8,128], index: 5, kind: output, shape index: {}]  }
   0x1   :  { %v874_v0 = vld [vmem:[%s1165_s1 + $0x38] sm:$0xff]  ;;  %v873_v3 = vld [vmem:[%s1165_s1 + $0x30] sm:$0xff]  ;;  %v872_v8 = vld [vmem:[%s1165_s1 + $0x28] sm:$0xff] }
   0x2   :  { %v882_v1 = vld [vmem:[%s1165_s1 + $0x78] sm:$0xff]  ;;  %435 = vmatpush.bf16.msra.mxu0 %v874_v0  ;;  %v881_v4 = vld [vmem:[%s1165_s1 + $0x70] sm:$0xff]  ;;  %v880_v9 = vld [vmem:[%s1165_s1 + $0x68] sm:$0xff] }
   0x3   :  { %v890_v2 = vld [vmem:[%s1165_s1 + $0xb8] sm:$0xff]  ;;  %448 = vmatpush.bf16.msra.mxu1 %v882_v1  ;;  %v889_v5 = vld [vmem:[%s1165_s1 + $0xb0] sm:$0xff]  ;;  %v888_v10 = vld [vmem:[%s1165_s1 + $0xa8] sm:$0xff] }
   0x4   :  { %461 = vmatpush.bf16.msra.mxu2 %v890_v2  ;;  %v898_v6 = vld [vmem:[%s1165_s1 + $0xf8] sm:$0xff]  ;;  %v897_v7 = vld [vmem:[%s1165_s1 + $0xf0] sm:$0xff]  ;;  %v896_v11 = vld [vmem:[%s1165_s1 + $0xe8] sm:$0xff] }
   0x5   :  { %474 = vmatpush.bf16.msra.mxu3 %v898_v6  ;;  %v871_v12 = vld [vmem:[%s1165_s1 + $0x20] sm:$0xff]  ;;  %v870_v16 = vld [vmem:[%s1165_s1 + $0x18] sm:$0xff]  ;;  %v869_v20 = vld [vmem:[%s1165_s1 + $0x10] sm:$0xff] }
   0x6   :  { %436 = vmatpush.bf16.msra.mxu0 %v873_v3  ;;  %v879_v13 = vld [vmem:[%s1165_s1 + $0x60] sm:$0xff]  ;;  %v878_v17 = vld [vmem:[%s1165_s1 + $0x58] sm:$0xff]  ;;  %v877_v21 = vld [vmem:[%s1165_s1 + $0x50] sm:$0xff] }
   0x7   :  { %449 = vmatpush.bf16.msra.mxu1 %v881_v4  ;;  %v887_v14 = vld [vmem:[%s1165_s1 + $0xa0] sm:$0xff]  ;;  %v886_v18 = vld [vmem:[%s1165_s1 + $0x98] sm:$0xff]  ;;  %v885_v22 = vld [vmem:[%s1165_s1 + $0x90] sm:$0xff] }
   0x8   :  { %462 = vmatpush.bf16.msra.mxu2 %v889_v5  ;;  %v895_v15 = vld [vmem:[%s1165_s1 + $0xe0] sm:$0xff]  ;;  %v894_v19 = vld [vmem:[%s1165_s1 + $0xd8] sm:$0xff]  ;;  %v893_v23 = vld [vmem:[%s1165_s1 + $0xd0] sm:$0xff] }
   0x9   :  { %475 = vmatpush.bf16.msra.mxu3 %v897_v7  ;;  %v868_v24 = vld [vmem:[%s1165_s1 + $0x8] sm:$0xff]  ;;  %v867_v27 = vld [vmem:[%s1165_s1] sm:$0xff]  ;;  %v906_v32 = vld [vmem:[%s1165_s1 + $0x138] sm:$0xff] }
   0xa   :  { %437 = vmatpush.bf16.msra.mxu0 %v872_v8  ;;  %v876_v25 = vld [vmem:[%s1165_s1 + $0x48] sm:$0xff]  ;;  %v875_v29 = vld [vmem:[%s1165_s1 + $0x40] sm:$0xff]  ;;  %v914_v33 = vld [vmem:[%s1165_s1 + $0x178] sm:$0xff] }
   0xb   :  { %450 = vmatpush.bf16.msra.mxu1 %v880_v9  ;;  %v884_v26 = vld [vmem:[%s1165_s1 + $0x88] sm:$0xff]  ;;  %v21_v30 = vld [vmem:[%s1167_s0] sm:$0xff]  ;;  %v23_v35 = vld [vmem:[%s1167_s0 + $0x10] sm:$0xff] }
   0xc   :  { %463 = vmatpush.bf16.msra.mxu2 %v888_v10  ;;  %v892_v28 = vld [vmem:[%s1165_s1 + $0xc8] sm:$0xff]  ;;  %v883_v34 = vld [vmem:[%s1165_s1 + $0x80] sm:$0xff]  ;;  %v28_v36 = vpack.c.bf16 %v21_v30, %v21_v30  ;;  %v24_v40 = vld [vmem:[%s1167_s0 + $0x18] sm:$0xff]  ;;  %v30_v43 = vpack.c.bf16 %v23_v35, %v23_v35 }
   0xd   :  { %476 = vmatpush.bf16.msra.mxu3 %v896_v11  ;;  %v22_v31 = vld [vmem:[%s1167_s0 + $0x8] sm:$0xff]  ;;  %v891_v38 = vld [vmem:[%s1165_s1 + $0xc0] sm:$0xff]  ;;  %v905_v41 = vld [vmem:[%s1165_s1 + $0x130] sm:$0xff]  ;;  %v31_v44 = vpack.c.bf16 %v24_v40, %v24_v40 }
   0xe   :  { %438 = vmatpush.bf16.msra.mxu0 %v871_v12  ;;  %v29_v37 = vpack.c.bf16 %v22_v31, %v22_v31  ;;  %v915_v39 = vld [vmem:[%s1165_s1 + $0x180] sm:$0xff]  ;;  %v913_v42 = vld [vmem:[%s1165_s1 + $0x170] sm:$0xff]  ;;  %v904_v45 = vld [vmem:[%s1165_s1 + $0x128] sm:$0xff] }
   0xf   :  { %451 = vmatpush.bf16.msra.mxu1 %v879_v13  ;;  %v912_v46 = vld [vmem:[%s1165_s1 + $0x168] sm:$0xff]  ;;  %v903_v47 = vld [vmem:[%s1165_s1 + $0x120] sm:$0xff]  ;;  %v902_v49 = vld [vmem:[%s1165_s1 + $0x118] sm:$0xff] }
  0x10   :  { %464 = vmatpush.bf16.msra.mxu2 %v887_v14  ;;  %v911_v48 = vld [vmem:[%s1165_s1 + $0x160] sm:$0xff]  ;;  %v910_v50 = vld [vmem:[%s1165_s1 + $0x158] sm:$0xff]  ;;  %v27_v51 = vld [vmem:[%s1167_s0 + $0x30] sm:$0xff] }
  0x11   :  { %477 = vmatpush.bf16.msra.mxu3 %v895_v15  ;;  %v901_v52 = vld [vmem:[%s1165_s1 + $0x110] sm:$0xff]  ;;  %v34_v54 = vpack.c.bf16 %v27_v51, %v27_v51  ;;  %v900_v55 = vld [vmem:[%s1165_s1 + $0x108] sm:$0xff]  ;;  %v899_v57 = vld [vmem:[%s1165_s1 + $0x100] sm:$0xff] }
  0x12   :  { %439 = vmatpush.bf16.msra.mxu0 %v870_v16  ;;  %v909_v53 = vld [vmem:[%s1165_s1 + $0x150] sm:$0xff]  ;;  %v908_v56 = vld [vmem:[%s1165_s1 + $0x148] sm:$0xff]  ;;  %v907_v58 = vld [vmem:[%s1165_s1 + $0x140] sm:$0xff] }
  0x13   :  { %452 = vmatpush.bf16.msra.mxu1 %v878_v17  ;;  %v25_v59 = vld [vmem:[%s1167_s0 + $0x20] sm:$0xff]  ;;  %v26_v60 = vld [vmem:[%s1167_s0 + $0x28] sm:$0xff]  ;;  %v923_v63 = vld [vmem:[%s1169_s3 + $0x38] sm:$0xff] }
  0x14   :  { %465 = vmatpush.bf16.msra.mxu2 %v886_v18  ;;  %v32_v61 = vpack.c.bf16 %v25_v59, %v25_v59  ;;  %v33_v62 = vpack.c.bf16 %v26_v60, %v26_v60  ;;  %v922_v0 = vld [vmem:[%s1169_s3 + $0x30] sm:$0xff]  ;;  %v921_v3 = vld [vmem:[%s1169_s3 + $0x28] sm:$0xff]  ;;  %v920_v4 = vld [vmem:[%s1169_s3 + $0x20] sm:$0xff] }
  0x15   :  { %478 = vmatpush.bf16.msra.mxu3 %v894_v19  ;;  %v919_v8 = vld [vmem:[%s1169_s3 + $0x18] sm:$0xff]  ;;  %v924_v10 = vld [vmem:[%s1166_s2] ss:$0 sm:$0xff]  ;;  %v918_v11 = vld [vmem:[%s1169_s3 + $0x10] sm:$0xff] }
  0x16   :  { %440 = vmatpush.bf16.msra.mxu0 %v869_v20  ;;  %v917_v12 = vld [vmem:[%s1169_s3 + $0x8] sm:$0xff]  ;;  %v916_v16 = vld [vmem:[%s1169_s3] sm:$0xff] }
  0x17   :  { %453 = vmatpush.bf16.msra.mxu1 %v877_v21  ;;  %v925_v35 = vld [vmem:[%s1168_s4] ss:$0 sm:$0xff] }
  0x18   :  { %466 = vmatpush.bf16.msra.mxu2 %v885_v22 }
  0x19   :  { %479 = vmatpush.bf16.msra.mxu3 %v893_v23 }
  0x1a   :  { %441 = vmatpush.bf16.msra.mxu0 %v868_v24 }
  0x1b   :  { %454 = vmatpush.bf16.msra.mxu1 %v876_v25 }
  0x1c   :  { %467 = vmatpush.bf16.msra.mxu2 %v884_v26 }
  0x1d   :  { %480 = vmatpush.bf16.msra.mxu3 %v892_v28 }
  0x1e   :  { %442 = vmatpush.bf16.msra.mxu0 %v867_v27 }
  0x1f   :  { %455 = vmatpush.bf16.msra.mxu1 %v875_v29 }
  0x20   :  { %468 = vmatpush.bf16.msra.mxu2 %v883_v34 }
  0x21   :  { %443 = vmatmul.bf16.vlgmr.msra.gmra.mxu0 %v28_v36  ;;  %481 = vmatpush.bf16.msra.mxu3 %v891_v38 }
  0x22   :  { %487 = vmatpush.bf16.msrb.mxu0 %v906_v32  ;;  %456 = vmatmul.bf16.vlgmr.msra.gmra.mxu1 %v29_v37 }
  0x23   :  { %500 = vmatpush.bf16.msrb.mxu1 %v914_v33  ;;  %469 = vmatmul.bf16.vlgmr.msra.gmra.mxu2 %v30_v43 }
  0x24   :  { %520 = vmatpush.bf16.msrb.mxu2 %v915_v39  ;;  %482 = vmatmul.bf16.vlgmr.msra.gmra.mxu3 %v31_v44 }
  0x25   :  { %600 = vmatpush.bf16.msrb.mxu3 %v923_v63 }
  0x26   :  { %488 = vmatpush.bf16.msrb.mxu0 %v905_v41 }
  0x27   :  { %501 = vmatpush.bf16.msrb.mxu1 %v913_v42 }
  0x29   :  { %601 = vmatpush.bf16.msrb.mxu3 %v922_v0 }
  0x2a   :  { %489 = vmatpush.bf16.msrb.mxu0 %v904_v45 }
  0x2b   :  { %502 = vmatpush.bf16.msrb.mxu1 %v912_v46 }
  0x2d   :  { %602 = vmatpush.bf16.msrb.mxu3 %v921_v3 }
  0x2e   :  { %490 = vmatpush.bf16.msrb.mxu0 %v903_v47 }
  0x2f   :  { %503 = vmatpush.bf16.msrb.mxu1 %v911_v48 }
  0x31   :  { %603 = vmatpush.bf16.msrb.mxu3 %v920_v4 }
  0x32   :  { %491 = vmatpush.bf16.msrb.mxu0 %v902_v49 }
  0x33   :  { %504 = vmatpush.bf16.msrb.mxu1 %v910_v50  ;;  %834 = vmatmul.msk.bf16.vlgmr.msrb.gmra.mxu2 %vm431_vm0, %v34_v54 }
  0x35   :  { %604 = vmatpush.bf16.msrb.mxu3 %v919_v8 }
  0x36   :  { %492 = vmatpush.bf16.msrb.mxu0 %v901_v52 }
  0x37   :  { %505 = vmatpush.bf16.msrb.mxu1 %v909_v53 }
  0x39   :  { %605 = vmatpush.bf16.msrb.mxu3 %v918_v11 }
  0x3a   :  { %493 = vmatpush.bf16.msrb.mxu0 %v900_v55 }
  0x3b   :  { %506 = vmatpush.bf16.msrb.mxu1 %v908_v56 }
  0x3d   :  { %606 = vmatpush.bf16.msrb.mxu3 %v917_v12 }
  0x3e   :  { %494 = vmatpush.bf16.msrb.mxu0 %v899_v57 }
  0x3f   :  { %507 = vmatpush.bf16.msrb.mxu1 %v907_v58 }
  0x41   :  { %495 = vmatmul.bf16.vlgmr.msrb.gmra.mxu0 %v32_v61  ;;  %607 = vmatpush.bf16.msrb.mxu3 %v916_v16 }
  0x42   :  { %508 = vmatmul.bf16.vlgmr.msrb.gmra.mxu1 %v33_v62 }
  0x9e   :  { %v444_v1 = vpop.f32.mrf.mxu0 }
  0x9f   :  { %v457_v2 = vpop.f32.mrf.mxu1  ;;  %v445_v13 = vadd.f32 %v924_v10, %v444_v1 }
  0xa1   :  { %v458_v17 = vadd.f32 %v457_v2, %v445_v13 }
  0xa6   :  { %v446_v5 = vpop.f32.mrf.mxu0  ;;  %v470_v7 = vpop.f32.mrf.mxu2 }
  0xa7   :  { %v459_v6 = vpop.f32.mrf.mxu1  ;;  %v483_v9 = vpop.f32.mrf.mxu3  ;;  %v471_v18 = vadd.f32 %v470_v7, %v458_v17 }
  0xa9   :  { %v484_v20 = vadd.f32 %v483_v9, %v471_v18 }
  0xae   :  { %v472_v14 = vpop.f32.mrf.mxu2 }
  0xaf   :  { %v485_v15 = vpop.f32.mrf.mxu3 }
  0xb6   :  { %v522_v19 = vpop.f32.mrf.mxu2 }
  0xbe   :  { %v496_v21 = vpop.f32.mrf.mxu0  ;;  %v524_v25 = vpop.f32.mrf.mxu2 }
  0xbf   :  { %v509_v22 = vpop.f32.mrf.mxu1  ;;  %v497_v23 = vadd.f32 %v496_v21, %v484_v20 }
  0xc1   :  { %v510_v24 = vadd.f32 %v509_v22, %v497_v23 }
  0xc3   :  { %v523_v26 = vadd.f32 %v522_v19, %v510_v24 }
  0xc5   :  { %v526_v27 = vsub.f32 0.0, %v523_v26 }
  0xc6   :  { %v498_v28 = vpop.f32.mrf.mxu0 }
  0xc7   :  { %v511_v29 = vpop.f32.mrf.mxu1  ;;  %v527_v30 = vmul.f32 1.442695, %v526_v27 }
  0xc9   :  { %926 = vpow2.f32 %v527_v30 }
  0xcf   :  { %v927_v31 = vpop.eup %926 }
  0xd0   :  { %v529_v32 = vadd.f32 1.0, %v927_v31 }
  0xd2   :  { %928 = vrcp.f32 %v529_v32 }
  0xd8   :  { %v929_v33 = vpop.eup %928 }
  0xd9   :  { %v531_v34 = vpack.c.bf16 %v929_v33, %v929_v33 }
  0xdb   :  { %608 = vmatmul.bf16.vlgmr.msrb.gmra.mxu3 %v531_v34 }
 0x15e   :  { %v609_v36 = vpop.f32.mrf.mxu3 }
 0x15f   :  { %v610_v37 = vadd.f32 %v925_v35, %v609_v36 }
 0x161   :  { %v613_v38 = vsub.f32 0.0, %v610_v37 }
 0x163   :  { %v614_v39 = vmul.f32 1.442695, %v613_v38 }
 0x165   :  { %930 = vpow2.f32 %v614_v39 }
 0x166   :  { %v611_v40 = vpop.f32.mrf.mxu3 }
 0x16b   :  { %v931_v41 = vpop.eup %930 }
 0x16c   :  { %v616_v42 = vadd.f32 1.0, %v931_v41 }
 0x16e   :  { %932 = vrcp.f32 %v616_v42  ;;  %v628_v46 = vand.u32 2147483648, %v616_v42  ;;  %v626_v48 = vand.u32 2147483647, %v616_v42  ;;  %vm622_vm2 = vweird.f32 %v616_v42 }
 0x170   :  { %v629_v50 = vor.u32 1.1754944e-38, %v628_v46  ;;  %vm627_vm4 = vcmp.eq.f32.partialorder %v626_v48, 8.507059e+37 }
 0x174   :  { %v933_v43 = vpop.eup %932 }
 0x175   :  { %v618_v44 = vmul.f32 %v933_v43, %v616_v42  ;;  %vm623_vm1 = vweird.f32 %v933_v43 }
 0x176   :  { %vm624_vm3 = vmor %vm622_vm2, %vm623_vm1 }
 0x177   :  { %v619_v45 = vsub.f32 1.0, %v618_v44 }
 0x179   :  { %v620_v47 = vmul.f32 %v933_v43, %v619_v45 }
 0x17b   :  { %v621_v49 = vadd.f32 %v933_v43, %v620_v47 }
 0x17d   :  { %v625_v51 = vsel %vm624_vm3, %v933_v43, %v621_v49 }
 0x17e   :  { %v630_v52 = vsel %vm627_vm4, %v629_v50, %v625_v51 }
 0x17f   :  { %v632_v53 = vpack.c.bf16 %v630_v52, %v630_v52 }
 0x181   :  { %633 = vst [vmem:[%s1170_s5] sm:$0xf] %v632_v53 }

</bundles_post_ra>
